<compile_context>
chip_gen: v6e
topology: v6e:2x2x1
jax: 0.10.0
libtpu: 0.0.40
codegen_flags: <defaults>
</compile_context>

<pallas_src>
import jax
import jax.numpy as jnp
from jax.experimental import pallas as pl
from jax.experimental.pallas import tpu as pltpu

PACK = 64   # batch rows folded per lane-dense row: [batch, 4] -> [batch/64, 256]
_IN = 4
_OUT = 2
_HI = jax.lax.Precision.HIGHEST


def fused_mlp_kernel(w_ref, b_ref, x_ref, o_ref):
    """One MXU dot per tile: out = x @ W_blockdiag + b.

    x_ref : VMEM [tile_r, 256]  -- 64 batch rows packed per reshaped row (natural layout)
    w_ref : VMEM [256, 128]     -- block-diagonal replication of fused [4, 2] weight
    b_ref : VMEM [1, 128]       -- fused bias tiled 64x
    o_ref : VMEM [tile_r, 128]  -- reshapes (free) back to [64 * tile_r, 2]
    """
    acc = jnp.dot(x_ref[...], w_ref[...],
                  preferred_element_type=jnp.float32, precision=_HI)
    o_ref[...] = (acc + b_ref[...]).astype(o_ref.dtype)


def _round_up(x, m):
    return (x + m - 1) // m * m


def _fuse_params(params):
    """Compose the three linear layers into one affine map (exact up to f32 rounding)."""
    w1, b1 = params["w1"], params["b1"]
    w2, b2 = params["w2"], params["b2"]
    w3, b3 = params["w3"], params["b3"]
    w_total = jnp.dot(jnp.dot(w1, w2, precision=_HI), w3, precision=_HI)          # [4, 2]
    b_total = jnp.dot(jnp.dot(b1, w2, precision=_HI) + b2, w3, precision=_HI) + b3  # [1, 2]
    return w_total, b_total


def mymodel_forward(x, params, *, block_batch=262144, min_pallas_batch=65536):
    """x: [batch, 4] float32 -> [batch, 2] float32 (same math as the PyTorch module)."""
    batch, in_f = x.shape
    assert in_f == _IN, f"expected {_IN} input features, got {in_f}"

    w_total, b_total = _fuse_params(params)

    # Small/medium batches: a single fused XLA affine is strictly faster than
    # pallas_call setup for this 24 B/row memory-bound op.
    if batch < min_pallas_batch:
        return jnp.dot(x, w_total, precision=_HI) + b_total

    # ---- Pallas path: block-diagonal MXU formulation, natural x layout --------------
    pad = (-batch) % PACK
    if pad:
        # TODO(synk): a non-multiple-of-64 batch costs one extra copy of x for padding;
        # aligned batches are copy-free end to end.
        x = jnp.pad(x, ((0, pad), (0, 0)))
    pbatch = batch + pad
    R = pbatch // PACK

    x_rs = x.reshape(R, PACK * _IN)                                   # free reshape
    w_bd = jnp.kron(jnp.eye(PACK, dtype=w_total.dtype), w_total)      # [256, 128]
    b_bd = jnp.tile(b_total.reshape(1, _OUT), (1, PACK))              # [1, 128]

    # Row-tile selection: big tiles (amortize ~0.35 us/step), >=2 grid steps when
    # possible (v7x megacore), sublane-aligned, double-buffered footprint << 32 MiB.
    tile_cap = max(_round_up(block_batch // PACK, 8), 8)
    if R > 8:
        tile_r = min(tile_cap, _round_up(pl.cdiv(R, 2), 8))
    else:
        tile_r = R
    if tile_r > R:
        tile_r = R
    grid_rows = pl.cdiv(R, tile_r)

    cost = pl.CostEstimate(
        flops=2 * R * (PACK * _IN) * (PACK * _OUT),
        transcendentals=0,
        bytes_accessed=4 * (R * PACK * (_IN + _OUT) + PACK * _IN * PACK * _OUT + PACK * _OUT),
    )

    out_rs = pl.pallas_call(
        fused_mlp_kernel,
        out_shape=jax.ShapeDtypeStruct((R, PACK * _OUT), x.dtype),
        grid=(grid_rows,),
        in_specs=[
            pl.BlockSpec((PACK * _IN, PACK * _OUT), lambda i: (0, 0)),  # resident weight
            pl.BlockSpec((1, PACK * _OUT), lambda i: (0, 0)),           # resident bias
            pl.BlockSpec((tile_r, PACK * _IN), lambda i: (i, 0)),       # x tile
        ],
        out_specs=pl.BlockSpec((tile_r, PACK * _OUT), lambda i: (i, 0)),
        compiler_params=pltpu.CompilerParams(
            dimension_semantics=("parallel",),
            vmem_limit_bytes=32 * 1024 * 1024,
        ),
        cost_estimate=cost,
    )(w_bd, b_bd, x_rs)

    out = out_rs.reshape(pbatch, _OUT)                                # free reshape
    return out[:batch] if pad else out


def init_params(key):
    """nn.Linear-style init: U(-1/sqrt(fan_in), 1/sqrt(fan_in)).

    Weights stored as [in, out] (transpose of PyTorch's [out, in]) so forward is x @ W;
    biases stored as [1, out].
    """
    def linear(key, fan_in, fan_out):
        kw, kb = jax.random.split(key)
        bound = 1.0 / jnp.sqrt(float(fan_in))
        w = jax.random.uniform(kw, (fan_in, fan_out), jnp.float32, -bound, bound)
        b = jax.random.uniform(kb, (1, fan_out), jnp.float32, -bound, bound)
        return w, b

    k1, k2, k3 = jax.random.split(key, 3)
    w1, b1 = linear(k1, 4, 6)
    w2, b2 = linear(k2, 6, 6)
    w3, b3 = linear(k3, 6, 2)
    return {"w1": w1, "b1": b1, "w2": w2, "b2": b2, "w3": w3, "b3": b3}


if __name__ == "__main__":
    key = jax.random.PRNGKey(0)
    kp, kx1, kx2, kx3 = jax.random.split(key, 4)
    params = init_params(kp)

    def reference(x):
        h = x @ params["w1"] + params["b1"]
        h = h @ params["w2"] + params["b2"]
        return h @ params["w3"] + params["b3"]

    # 1) Tiny batch: fused jnp fallback path.
    x_small = jax.random.normal(kx1, (8, 4), jnp.float32)
    out_small = jax.block_until_ready(mymodel_forward(x_small, params))
    assert out_small.shape == (8, 2)
    assert jnp.allclose(out_small, reference(x_small), atol=1e-4, rtol=1e-4)

    # 2) Pallas path forced at a modest size: batch not a multiple of 64 (exercises the
    #    padding path), small tile so the grid has 3 steps incl. a partial tail block.
    batch_mid = 4611
    x_mid = jax.random.normal(kx2, (batch_mid, 4), jnp.float32)
    out_mid = jax.block_until_ready(
        mymodel_forward(x_mid, params, block_batch=2048, min_pallas_batch=0))
    assert out_mid.shape == (batch_mid, 2)
    assert jnp.allclose(out_mid, reference(x_mid), atol=1e-4, rtol=1e-4)

    # 3) Pallas path with default tiling: 2 grid steps of 4096x256 tiles (both TCs on v7x).
    batch_big = 524288
    x_big = jax.random.normal(kx3, (batch_big, 4), jnp.float32)
    out_big = jax.block_until_ready(mymodel_forward(x_big, params))
    assert out_big.shape == (batch_big, 2)
    assert jnp.allclose(out_big, reference(x_big), atol=1e-4, rtol=1e-4)

    print("KERNEL_OK")
</pallas_src>

<mosaic_0001>
module attributes {stable_mosaic.version = 11 : i64} {
  func.func @fused_mlp_kernel(%arg0: i32, %arg1: memref<256x128xf32, #tpu.memory_space<vmem>>, %arg2: memref<1x128xf32, #tpu.memory_space<vmem>>, %arg3: memref<32x256xf32, #tpu.memory_space<vmem>>, %arg4: memref<32x128xf32, #tpu.memory_space<vmem>>) attributes {dimension_semantics = [#tpu.dimension_semantics<parallel>], iteration_bounds = array<i64: 3>, scalar_prefetch = 0 : i64, scratch_operands = 0 : i64, tpu.core_type = #tpu.core_type<tc>, window_params = [{pipeline_mode = #tpu.pipeline_mode<synchronous>, transform_indices = @transform_0, window_bounds = array<i64: 256, 128>}, {pipeline_mode = #tpu.pipeline_mode<synchronous>, transform_indices = @transform_1, window_bounds = array<i64: 1, 128>}, {transform_indices = @transform_2, window_bounds = array<i64: 32, 256>}, {transform_indices = @transform_3, window_bounds = array<i64: 32, 128>}]} {
    %c0 = arith.constant 0 : index
    %c0_0 = arith.constant 0 : index
    %0 = vector.load %arg3[%c0, %c0_0] : memref<32x256xf32, #tpu.memory_space<vmem>>, vector<32x256xf32>
    %c0_1 = arith.constant 0 : index
    %c0_2 = arith.constant 0 : index
    %1 = vector.load %arg1[%c0_1, %c0_2] : memref<256x128xf32, #tpu.memory_space<vmem>>, vector<256x128xf32>
    %cst = arith.constant dense<0.000000e+00> : vector<32x128xf32>
    %2 = tpu.matmul %0, %1, %cst {dimension_numbers = #tpu.dot_dimension_numbers<[1], [0], [0], [1], [0, 0, 1, 1], [], []>, precision = #tpu.contract_precision<fp32>} : vector<32x256xf32>, vector<256x128xf32>, vector<32x128xf32> -> vector<32x128xf32>
    %c0_3 = arith.constant 0 : index
    %c0_4 = arith.constant 0 : index
    %3 = vector.load %arg2[%c0_3, %c0_4] : memref<1x128xf32, #tpu.memory_space<vmem>>, vector<1x128xf32>
    %4 = vector.broadcast %3 : vector<1x128xf32> to vector<32x128xf32>
    %5 = arith.addf %2, %4 : vector<32x128xf32>
    %c0_5 = arith.constant 0 : index
    %c0_6 = arith.constant 0 : index
    %6 = vector.load %arg4[%c0_5, %c0_6] : memref<32x128xf32, #tpu.memory_space<vmem>>, vector<32x128xf32>
    tpu.vector_store %arg4[%c0_5, %c0_6], %5 {strides = array<i32>} : memref<32x128xf32, #tpu.memory_space<vmem>>, vector<32x128xf32>,
    return
  }
  func.func @transform_0(%arg0: i32) -> (i32, i32) {
    %c0_i32 = arith.constant 0 : i32
    %c0_i32_0 = arith.constant 0 : i32
    %c0_i32_1 = arith.constant 0 : i32
    return %c0_i32, %c0_i32_0 : i32, i32
  }
  func.func @transform_1(%arg0: i32) -> (i32, i32) {
    %c0_i32 = arith.constant 0 : i32
    %c0_i32_0 = arith.constant 0 : i32
    %c0_i32_1 = arith.constant 0 : i32
    return %c0_i32, %c0_i32_0 : i32, i32
  }
  func.func @transform_2(%arg0: i32) -> (i32, i32) {
    %c0_i32 = arith.constant 0 : i32
    %c0_i32_0 = arith.constant 0 : i32
    return %arg0, %c0_i32 : i32, i32
  }
  func.func @transform_3(%arg0: i32) -> (i32, i32) {
    %c0_i32 = arith.constant 0 : i32
    %c0_i32_0 = arith.constant 0 : i32
    return %arg0, %c0_i32 : i32, i32
  }
}

</mosaic_0001>

<bundles_post_ra>
// kernel: tpu_custom_call.1
= control target key start
LH: loop header
LB: loop body
LE: loop exit
PB: predicated region body
PF: predicated region fallthrough
CT: control target
= control target key end

     0   :  { %8 = vsyncpa [#allocation3], 0  ;;  %s2814_s0 = inlined_call_operand.hbm [shape: f32[256,128], index: 0, kind: input, shape index: {}]   ;;  %s2815_s1 = inlined_call_operand.vmem [shape: f32[1,128], index: 1, kind: input, shape index: {}]   ;;  %s2816_s2 = inlined_call_operand.hbm [shape: f32[73,256], index: 2, kind: input, shape index: {}]   ;;  %s2817_s3 = inlined_call_operand.hbm [shape: f32[73,128], index: 3, kind: output, shape index: {}]  }
   0x1   :  { %9 = vsyncpa [#allocation6], 0 }
   0x2   :  { %11 = vsyncpa [#allocation6 + $0x1], 0 }
   0x3   :  { %12 = vsyncpa [#allocation4], 0 }
   0x4   :  { %14 = vsyncpa [#allocation4 + $0x1], 0  ;;  %s1911_s12 = smov 0   ;;  %s1913_s13 = smov 0  }
   0x5   :  { %s1915_s14 = smov 0   ;;  %s1917_s15 = smov 0  }
   0x6 LB: > { %s1932_s16 = sadd.s32 4294967295, %s1880_s15   ;;  %s1409_s17 = sadd.s32 4294967294, %s1880_s15   ;;  %s1880_s15 = sphi %s1917_s15, %s3041_s15   ;;  %s1876_s14 = sphi %s1915_s14, %s3040_s14   ;;  %s1872_s13 = sphi %s1913_s13, %s3039_s13   ;;  %s1868_s12 = sphi %s1911_s12, %s3038_s12  }
   0x7   : > { %s1936_s18 = sadd.s32 1, %s1880_s15   ;;  %s69_s19 = sadd.s32 1, %s1876_s14 }
   0x8   : > { %s66_s20 = ssub.s32 %s1880_s15, %s1936_s18  ;;  %p76_p0 = scmp.ne.s32.totalorder %s1876_s14, %s1872_s13 }
   0x9   : > { %p67_p1 = scmp.eq.s32.totalorder %s66_s20, 0  ;;  %p77_p2 = scmp.eq.s32.totalorder %s1880_s15, 0 }
   0xa   : > { %p82_p3 = scmp.ne.s32.totalorder %s1872_s13, %s1868_s12  ;;  %p83_p4 = scmp.eq.s32.totalorder %s1932_s16, 0 }
   0xb   : > { %s1948_s21 = scalar_select %p67_p1, %s1876_s14, %s69_s19  }
   0xc   : > { %p1950_p5 = por %p77_p2, %p76_p0  ;;  %p1956_p6 = por %p83_p4, %p82_p3 }
   0xd   : > { %p106_p7 = scmp.eq.s32.totalorder %s1932_s16, 2  ;;  %p112_p8 = scmp.eq.s32.totalorder %s1409_s17, 2 }
   0xe   : > { %s2908_s23 = scalar_select %p1956_p6, 1, 0 }
   0xf   : > { %p1410_p9 = scmp.ge.s32.totalorder %s1880_s15, 1  ;;  %p119_p10 = scmp.lt.s32.totalorder %s1880_s15, 4 }
  0x10   : > { %p1963_p11 = por %p106_p7, %p76_p0  ;;  %p1967_p12 = por %p112_p8, %p82_p3 }
  0x11   : > { %p1971_p13 = pnand %p1410_p9, %p119_p10  ;;  %s1882_s27 = smov [#allocation2]  }
  0x12   : > { %s2909_s24 = scalar_select %p1963_p11, 1, 0 }
  0x13   : > { %s2910_s25 = scalar_select %p1967_p12, 1, 0 }
  0x14   : > { %p1710_p1 = pneg %p1971_p13  ;;  %s131_s28 = sshll.u32 %s1882_s27, 4  ;;  %s132_s28 = int_to_ptr.vmem [resolvable:$true] %s131_s28 }
  0x15   : > { %s1771_s29 = scalar_lea.vmem %s132_s28, 4096  ;;  %p1779_p8 = scmp.lt.s32.totalorder %s132_s28, %s132_s28 }
  0x16   : > { %p1711_p2 = pnand %p1710_p1, %p83_p4  ;;  %p1772_p7 = scmp.ne.s32.totalorder %s132_s28, %s1771_s29 }
  0x17   : > { %p1780_p6 = scmp.lt.s32.totalorder %s1771_s29, %s1771_s29 }
  0x18   : > { %p1762_p0 = pneg %p1711_p2 }
  0x19   : > { %p1781_p12 = por %p1780_p6, %p1779_p8 }
  0x1a   : > { %p1774_p11 = pnand %p1772_p7, %p1762_p0 }
  0x1c   : > { %p1775_p3 = pneg %p1774_p11 }
  0x1e   : > { %p1782_p9 = pnand %p1781_p12, %p1775_p3 }
  0x20   : > { %1785 = shalt.err (!%p1782_p9)
}
  0x21   : > { %s1883_s30 = smov 128   ;;  %s1884_s4 = smov 8  }
  0x22   : > { %1713 = dma.hbm_to_vmem [thread:$0]  (!%p1711_p2), %s2814_s0, 4096, %s132_s28, [#allocation3], %s1883_s30, %s1883_s30, %s1884_s4  }
  0x23   : > { %p1412_p10 = scmp.ge.s32.totalorder %s1880_s15, 3 }
  0x25   : > { %144 = sbr.rel (%p1412_p10) target bundleno = 74 (0x4a), region = 24 }
  0x2a   : > { %147 = sbr.rel (!%p1950_p5) target bundleno = 74 (0x4a), region = 28  ;;  %s148_s7 = sand.u32 (%p1950_p5), 1, %s1876_s14  }
  0x2b   : > { %s1414_s8 = sshll.u32 (%p1950_p5), %s1880_s15, 2  ;;  %s1413_s9 = sshll.u32 (%p1950_p5), %s148_s7, 6 }
  0x2c   : > { %s154_s10 = ssub.s32 (%p1950_p5), 10, %s1414_s8  ;;  %s1990_s19 = scalar_lea.sflag (%p1950_p5), [#allocation6], %s148_s7 }
  0x2d   : > { %p155_p6 = scmp.lt.s32.totalorder (%p1950_p5), %s154_s10, 4  ;;  %s152_s20 = scalar_lea.vmem (%p1950_p5), [#allocation5], %s1413_s9 }
  0x2f   : > { %s3043_s10 = smov (!%p155_p6, %s154_s10), 4 }
  0x30   : > { %s1987_s11 = sshll.u32 %s3043_s10, 8 }
  0x31   : > { %s160_s17 = ssub.s32 1024, %s1987_s11 }
  0x32   : > { %161 = vsyncadd %s1990_s19, %s160_s17  ;;  %p1417_p5 = scmp.ne.s32.totalorder %s1987_s11, 0  ;;  %s1438_s22 = sshll.u32 %s1880_s15, 10 }
  0x33   : > { %s1998_s29 = scalar_lea.hbm %s2816_s2, %s1438_s22  ;;  %s167_s30 = sshll.u32 %s152_s20, 4  ;;  %s2000_s30 = int_to_ptr.vmem [resolvable:$true] %s167_s30 }
  0x34   : > { %s1786_s4 = scalar_lea.hbm %s1998_s29, %s1987_s11  ;;  %s1790_s7 = scalar_lea.hbm %s2816_s2, 2560 }
  0x35   : > { %p1787_p11 = scmp.ne.s32.totalorder %s1998_s29, %s1786_s4  ;;  %p1791_p2 = scmp.lt.s32.totalorder %s1998_s29, %s2816_s2 }
  0x36   : > { %p1792_p0 = scmp.lt.s32.totalorder %s1790_s7, %s1786_s4 }
  0x37   : > { %p1788_p12 = pnand %p1787_p11, %p1417_p5 }
  0x38   : > { %p1793_p7 = por %p1792_p0, %p1791_p2 }
  0x39   : > { %p1789_p1 = pneg %p1788_p12 }
  0x3b   : > { %p1794_p3 = pnand %p1793_p7, %p1789_p1 }
  0x3d   : > { %1797 = shalt.err (!%p1794_p3)
}
  0x3e   : > { %s1798_s10 = scalar_lea.vmem %s2000_s30, %s1987_s11  ;;  %s1885_s17 = smov [#allocation5]  }
  0x3f   : > { %p1799_p8 = scmp.ne.s32.totalorder %s2000_s30, %s1798_s10  ;;  %s1802_s20 = sshll.u32 %s1885_s17, 4  ;;  %s1803_s20 = int_to_ptr.vmem [resolvable:$false] %s1802_s20 }
  0x40   : > { %s1804_s22 = scalar_lea.vmem %s1803_s20, 2048  ;;  %p1805_p6 = scmp.lt.s32.totalorder %s2000_s30, %s1803_s20 }
  0x41   : > { %p1800_p9 = pnand %p1799_p8, %p1417_p5  ;;  %p1806_p11 = scmp.lt.s32.totalorder %s1804_s22, %s1798_s10 }
  0x43   : > { %p1801_p10 = pneg %p1800_p9  ;;  %p1807_p12 = por %p1806_p11, %p1805_p6 }
  0x45   : > { %p1808_p2 = pnand %p1807_p12, %p1801_p10 }
  0x47   : > { %1811 = shalt.err (!%p1808_p2)
}
  0x48   : > { %s1886_s27 = smov 256   ;;  %s1887_s28 = smov 16  }
  0x49   : > { %173 = dma.hbm_to_vmem [thread:$0]  (%p1417_p5), %s1998_s29, %s1987_s11, %s2000_s30, %s1990_s19, %s1886_s27, %s1886_s27, %s1887_s28  }
  0x4a PF: > { %179 = sbr.rel (%p1971_p13) target bundleno = 453 (0x1c5), region = 32 }
  0x4f   : > { %1855 = dma.done.wait (%p83_p4), [#allocation3], 4096  }
  0x50   : > { %1857 = vsyncadd (%p83_p4), [#allocation3], 4294963200  ;;  %s2033_s4 = sand.u32 1, %s1872_s13   ;;  %p2912_p5 = scmp.ne.s32.totalorder %s2908_s23, 0 }
  0x51   : > { %s1424_s5 = sshll.u32 %s2033_s4, 6  ;;  %s186_s6 = scalar_lea.sflag [#allocation6], %s2033_s4 }
  0x52   : > { %s2037_s11 = scalar_lea.vmem [#allocation5], %s1424_s5 }
  0x53   : > { %1859 = dma.done.wait (%p2912_p5), %s186_s6, 1024  }
  0x54   : > { %1861 = vsyncadd (%p2912_p5), %s186_s6, 4294966272  ;;  %v262_v0 = vld [vmem:[#allocation2 + $0xf8] sm:$0xff]  ;;  %v261_v2 = vld [vmem:[#allocation2 + $0xf0] sm:$0xff]  ;;  %s1425_s19 = sshll.u32 %s2033_s4, 5  ;;  %s1305_s30 = scalar_lea.sflag [#allocation4], %s2033_s4 }
  0x55   : > { %v246_v1 = vld [vmem:[#allocation2 + $0x78] sm:$0xff]  ;;  %v2043_v3 = vand.u32 4294901760, %v262_v0  ;;  %v2047_v5 = vand.u32 4294901760, %v261_v2  ;;  %v245_v6 = vld [vmem:[#allocation2 + $0x70] sm:$0xff]  ;;  %v260_v7 = vld [vmem:[#allocation2 + $0xe8] sm:$0xff]  ;;  %s2747_s29 = scalar_lea.vmem [#allocation7], %s1425_s19 }
  0x56   : > { %v2045_v4 = vand.u32 4294901760, %v246_v1  ;;  %v244_v8 = vld [vmem:[#allocation2 + $0x68] sm:$0xff]  ;;  %v2049_v9 = vand.u32 4294901760, %v245_v6  ;;  %v2051_v10 = vand.u32 4294901760, %v260_v7  ;;  %v259_v12 = vld [vmem:[#allocation2 + $0xe0] sm:$0xff]  ;;  %v258_v14 = vld [vmem:[#allocation2 + $0xd8] sm:$0xff] }
  0x57   : > { %v2053_v11 = vand.u32 4294901760, %v244_v8  ;;  %v243_v13 = vld [vmem:[#allocation2 + $0x60] sm:$0xff]  ;;  %1440 = vmatprep.subr.mxu0 %v2043_v3  ;;  %v2056_v15 = vand.u32 4294901760, %v259_v12  ;;  %v2060_v17 = vand.u32 4294901760, %v258_v14  ;;  %v2063_v18 = vsub.f32 %v262_v0, %v2043_v3  ;;  %v2065_v19 = vld [vmem:[#allocation2 + $0x58] sm:$0xff]  ;;  %v2067_v20 = vld [vmem:[#allocation2 + $0xd0] sm:$0xff] }
  0x58   : > { %v2058_v16 = vand.u32 4294901760, %v243_v13  ;;  %v2069_v21 = vld [vmem:[#allocation2 + $0x50] sm:$0xff]  ;;  %1441 = vmatpush3.msra.mxu0 %v2045_v4  ;;  %v2073_v22 = vand.u32 4294901760, %v2065_v19  ;;  %v2076_v23 = vsub.f32 %v246_v1, %v2045_v4  ;;  %v2079_v24 = vand.u32 4294901760, %v2067_v20  ;;  %v2084_v26 = vld [vmem:[#allocation2 + $0xc8] sm:$0xff]  ;;  %v2088_v28 = vld [vmem:[#allocation2 + $0xc0] sm:$0xff] }
  0x59   : > { %2913 = vst [vmem:[#allocation11_spill] sm:$0xff] %v2053_v11  ;;  %2915 = vst [vmem:[#allocation13_spill] sm:$0xff] %v2063_v18  ;;  %v2082_v25 = vsub.f32 %v261_v2, %v2047_v5  ;;  %v2086_v27 = vld [vmem:[#allocation2 + $0x48] sm:$0xff]  ;;  %1442 = vmatprep.subr.mxu0 %v2047_v5  ;;  %v2832_v29 = vand.u32 4294901760, %v2063_v18  ;;  %v2093_v30 = vand.u32 4294901760, %v2069_v21  ;;  %v2096_v31 = vsub.f32 %v245_v6, %v2049_v9  ;;  %v2110_v37 = vld [vmem:[#allocation2 + $0x40] sm:$0xff] }
  0x5a   : > { %2914 = vst [vmem:[#allocation12_spill] sm:$0xff] %v2058_v16  ;;  %2916 = vst [vmem:[#allocation14_spill] sm:$0xff] %v2073_v22  ;;  %v2099_v32 = vand.u32 4294901760, %v2084_v26  ;;  %1443 = vmatpush3.msra.mxu0 %v2049_v9  ;;  %v2830_v33 = vand.u32 4294901760, %v2076_v23  ;;  %v2105_v35 = vsub.f32 %v260_v7, %v2051_v10  ;;  %v2108_v36 = vand.u32 4294901760, %v2086_v27  ;;  %v2134_v46 = vld [vmem:[#allocation2 + $0xb8] sm:$0xff] }
  0x5b   : > { %2917 = vst [vmem:[#allocation15_spill] sm:$0xff] %v2079_v24  ;;  %2918 = vst [vmem:[#allocation16_spill] sm:$0xff] %v2093_v30  ;;  %v2829_v34 = vand.u32 4294901760, %v2082_v25  ;;  %1444 = vmatprep.subr.mxu0 %v2051_v10  ;;  %v543_v38 = vsub.f32 %v2063_v18, %v2832_v29  ;;  %v2827_v39 = vand.u32 4294901760, %v2096_v31  ;;  %v2118_v40 = vsub.f32 %v244_v8, %v2053_v11  ;;  %v2144_v51 = vld [vmem:[#allocation2 + $0x38] sm:$0xff]  ;;  %v2151_v56 = vld [vmem:[#allocation2 + $0xb0] sm:$0xff] }
  0x5c   : > { %2919 = vst [vmem:[#allocation17_spill] sm:$0xff] %v2099_v32  ;;  %2920 = vst [vmem:[#allocation18_spill] sm:$0xff] %v2108_v36  ;;  %v2121_v41 = vand.u32 4294901760, %v2088_v28  ;;  %1445 = vmatpush3.msra.mxu0 %v2053_v11  ;;  %v431_v42 = vsub.f32 %v2076_v23, %v2830_v33  ;;  %v2825_v44 = vand.u32 4294901760, %v2105_v35  ;;  %v2132_v45 = vsub.f32 %v259_v12, %v2056_v15  ;;  %v2163_v61 = vld [vmem:[#allocation2 + $0x30] sm:$0xff]  ;;  %v2175_v2 = vld [vmem:[#allocation2 + $0xa8] sm:$0xff] }
  0x5d   : > { %v550_v43 = vsub.f32 %v2082_v25, %v2829_v34  ;;  %1446 = vmatprep.subr.mxu0 %v2056_v15  ;;  %v544_v47 = vand.u32 4294901760, %v543_v38  ;;  %v438_v48 = vsub.f32 %v2096_v31, %v2827_v39  ;;  %v2824_v49 = vand.u32 4294901760, %v2118_v40  ;;  %v2266_v39 = vld [vmem:[#allocation2 + $0x90] sm:$0xff]  ;;  %p3036_p4 = scmp.ne.s32.totalorder %s2909_s24, 0 }
  0x5e   : > { %2921 = vst [vmem:[#allocation19_spill] sm:$0xff] %v2121_v41  ;;  %v2142_v50 = vand.u32 4294901760, %v2110_v37  ;;  %1447 = vmatpush3.msra.mxu0 %v2058_v16  ;;  %v432_v52 = vand.u32 4294901760, %v431_v42  ;;  %v557_v54 = vsub.f32 %v2105_v35, %v2825_v44  ;;  %v2822_v55 = vand.u32 4294901760, %v2132_v45  ;;  %v2276_v34 = vld [vmem:[#allocation2 + $0x10] sm:$0xff]  ;;  %s1428_s7 = sshll.u32 (%p3036_p4), %s1932_s16, 2 }
  0x5f   : > { %v551_v53 = vand.u32 4294901760, %v550_v43  ;;  %1448 = vmatprep.subr.mxu0 %v2060_v17  ;;  %1484 = vmatprep.subr.mxu1 %v544_v47  ;;  %v439_v57 = vand.u32 4294901760, %v438_v48  ;;  %v445_v58 = vsub.f32 %v2118_v40, %v2824_v49  ;;  %v2158_v59 = vsub.f32 %v243_v13, %v2058_v16  ;;  %v2186_v13 = vld [vmem:[#allocation2 + $0x28] sm:$0xff]  ;;  %v2253_v49 = vld [vmem:[#allocation2 + $0x18] sm:$0xff]  ;;  %s1313_s8 = ssub.s32 (%p3036_p4), 10, %s1428_s7 }
  0x60   : > { %2922 = vst [vmem:[#allocation20_spill] sm:$0xff] %v2142_v50  ;;  %v2161_v60 = vand.u32 4294901760, %v2134_v46  ;;  %1449 = vmatpush3.msra.mxu0 %v2073_v22  ;;  %1485 = vmatpush3.msra.mxu1 %v432_v52  ;;  %v558_v62 = vand.u32 4294901760, %v557_v54  ;;  %v564_v63 = vsub.f32 %v2132_v45, %v2822_v55  ;;  %v2170_v0 = vsub.f32 %v258_v14, %v2060_v17  ;;  %p1314_p13 = scmp.lt.s32.totalorder (%p3036_p4), %s1313_s8, 4 }
  0x61   : > { %v2173_v1 = vand.u32 4294901760, %v2144_v51  ;;  %1450 = vmatprep.subr.mxu0 %v2079_v24  ;;  %1486 = vmatprep.subr.mxu1 %v551_v53  ;;  %v446_v6 = vand.u32 4294901760, %v445_v58  ;;  %v2820_v7 = vand.u32 4294901760, %v2158_v59  ;;  %v2181_v8 = vsub.f32 %v2065_v19, %v2073_v22 }
  0x62   : > { %2923 = vst [vmem:[#allocation21_spill] sm:$0xff] %v2161_v60  ;;  %v2184_v12 = vand.u32 4294901760, %v2151_v56  ;;  %1451 = vmatpush3.msra.mxu0 %v2093_v30  ;;  %1487 = vmatpush3.msra.mxu1 %v439_v57  ;;  %v565_v14 = vand.u32 4294901760, %v564_v63  ;;  %v2819_v38 = vand.u32 4294901760, %v2170_v0  ;;  %v2192_v42 = vsub.f32 %v2067_v20, %v2079_v24  ;;  %v2209_v20 = vld [vmem:[#allocation2 + $0xa0] sm:$0xff] }
  0x63   : > { %2924 = vst [vmem:[#allocation22_spill] sm:$0xff] %v2173_v1  ;;  %v2195_v43 = vand.u32 4294901760, %v2163_v61  ;;  %1452 = vmatprep.subr.mxu0 %v2099_v32  ;;  %1488 = vmatprep.subr.mxu1 %v558_v62  ;;  %v452_v19 = vsub.f32 %v2158_v59, %v2820_v7  ;;  %v2821_v47 = vand.u32 4294901760, %v2181_v8  ;;  %v2204_v48 = vsub.f32 %v2069_v21, %v2093_v30 }
  0x64   : > { %2925 = vst [vmem:[#allocation23_spill] sm:$0xff] %v2184_v12  ;;  %v2207_v52 = vand.u32 4294901760, %v2175_v2  ;;  %1453 = vmatpush3.msra.mxu0 %v2108_v36  ;;  %1489 = vmatpush3.msra.mxu1 %v446_v6  ;;  %v571_v53 = vsub.f32 %v2170_v0, %v2819_v38  ;;  %v2823_v54 = vand.u32 4294901760, %v2192_v42  ;;  %v2218_v57 = vsub.f32 %v2084_v26, %v2099_v32  ;;  %v2232_v38 = vld [vmem:[#allocation2 + $0x20] sm:$0xff] }
  0x65   : > { %2926 = vst [vmem:[#allocation24_spill] sm:$0xff] %v2195_v43  ;;  %v2221_v21 = vand.u32 4294901760, %v2186_v13  ;;  %1454 = vmatprep.subr.mxu0 %v2121_v41  ;;  %1490 = vmatprep.subr.mxu1 %v565_v14  ;;  %v453_v58 = vand.u32 4294901760, %v452_v19  ;;  %v459_v62 = vsub.f32 %v2181_v8, %v2821_v47  ;;  %v2826_v63 = vand.u32 4294901760, %v2204_v48  ;;  %v2242_v47 = vld [vmem:[#allocation2 + $0x98] sm:$0xff] }
  0x66   : > { %2927 = vst [vmem:[#allocation25_spill] sm:$0xff] %v2207_v52  ;;  %2928 = vst [vmem:[#allocation26_spill] sm:$0xff] %v2218_v57  ;;  %v2230_v6 = vsub.f32 %v2086_v27, %v2108_v36  ;;  %1455 = vmatpush3.msra.mxu0 %v2142_v50  ;;  %v572_v26 = vand.u32 4294901760, %v571_v53  ;;  %v578_v14 = vsub.f32 %v2192_v42, %v2823_v54  ;;  %v2828_v19 = vand.u32 4294901760, %v2218_v57  ;;  %v224_v36 = vld [vmem:[%s2037_s11 + $0x8] sm:$0xff] }
  0x67   : > { %2929 = vst [vmem:[#allocation27_spill] sm:$0xff] %v2221_v21  ;;  %v2240_v7 = vand.u32 4294901760, %v2209_v20  ;;  %1491 = vmatpush3.msra.mxu1 %v453_v58  ;;  %1456 = vmatprep.subr.mxu0 %v2161_v60  ;;  %v460_v27 = vand.u32 4294901760, %v459_v62  ;;  %v466_v55 = vsub.f32 %v2204_v48, %v2826_v63  ;;  %v2251_v54 = vsub.f32 %v2088_v28, %v2121_v41 }
  0x68   : > { %v2831_v53 = vand.u32 4294901760, %v2230_v6  ;;  %1492 = vmatprep.subr.mxu1 %v572_v26  ;;  %1457 = vmatpush3.msra.mxu0 %v2173_v1  ;;  %v579_v44 = vand.u32 4294901760, %v578_v14  ;;  %v585_v58 = vsub.f32 %v2218_v57, %v2828_v19  ;;  %v2260_v62 = vand.u32 4294901760, %v2232_v38 }
  0x69   : > { %2930 = vst [vmem:[#allocation28_spill] sm:$0xff] %v2240_v7  ;;  %2931 = vst [vmem:[#allocation29_spill] sm:$0xff] %v2251_v54  ;;  %v2264_v63 = vsub.f32 %v2110_v37, %v2142_v50  ;;  %1493 = vmatpush3.msra.mxu1 %v460_v27  ;;  %1458 = vmatprep.subr.mxu0 %v2184_v12  ;;  %v467_v28 = vand.u32 4294901760, %v466_v55  ;;  %v2835_v14 = vand.u32 4294901760, %v2251_v54  ;;  %v2274_v19 = vand.u32 4294901760, %v2242_v47 }
  0x6a   : > { %v473_v26 = vsub.f32 %v2230_v6, %v2831_v53  ;;  %1494 = vmatprep.subr.mxu1 %v579_v44  ;;  %1459 = vmatpush3.msra.mxu0 %v2195_v43  ;;  %v586_v37 = vand.u32 4294901760, %v585_v58  ;;  %v2282_v55 = vsub.f32 %v2134_v46, %v2161_v60  ;;  %v2285_v33 = vand.u32 4294901760, %v2253_v49  ;;  %v2287_v53 = vld [vmem:[#allocation2 + $0x88] sm:$0xff] }
  0x6b   : > { %2932 = vst [vmem:[#allocation30_spill] sm:$0xff] %v2274_v19  ;;  %v2838_v27 = vand.u32 4294901760, %v2264_v63  ;;  %1495 = vmatpush3.msra.mxu1 %v467_v28  ;;  %1460 = vmatprep.subr.mxu0 %v2207_v52  ;;  %v592_v44 = vsub.f32 %v2251_v54, %v2835_v14  ;;  %v2295_v58 = vsub.f32 %v2144_v51, %v2173_v1  ;;  %v2298_v46 = vand.u32 4294901760, %v2266_v39  ;;  %v2312_v51 = vld [vmem:[#allocation2 + $0x8] sm:$0xff] }
  0x6c   : > { %2933 = vst [vmem:[#allocation31_spill] sm:$0xff] %v2282_v55  ;;  %2934 = vst [vmem:[#allocation32_spill] sm:$0xff] %v2285_v33  ;;  %v474_v29 = vand.u32 4294901760, %v473_v26  ;;  %1496 = vmatprep.subr.mxu1 %v586_v37  ;;  %1461 = vmatpush3.msra.mxu0 %v2221_v21  ;;  %v2307_v60 = vsub.f32 %v2151_v56, %v2184_v12  ;;  %v2310_v14 = vand.u32 4294901760, %v2276_v34  ;;  %v2321_v26 = vand.u32 4294901760, %v2287_v53  ;;  %v2323_v56 = vld [vmem:[#allocation2 + $0x80] sm:$0xff] }
  0x6d   : > { %2935 = vst [vmem:[#allocation33_spill] sm:$0xff] %v2298_v46  ;;  %v480_v28 = vsub.f32 %v2264_v63, %v2838_v27  ;;  %1462 = vmatprep.subr.mxu0 %v2240_v7  ;;  %v593_v37 = vand.u32 4294901760, %v592_v44  ;;  %v2318_v27 = vsub.f32 %v2163_v61, %v2195_v43  ;;  %v2939_v50 = vand.u32 4294901760, %v2282_v55  ;;  %v2346_v44 = vld [vmem:[#allocation2] sm:$0xff] }
  0x6e   : > { %2936 = vst [vmem:[#allocation34_spill] sm:$0xff] %v2307_v60  ;;  %2937 = vst [vmem:[#allocation35_spill] sm:$0xff] %v2310_v14  ;;  %1497 = vmatpush3.msra.mxu1 %v474_v29  ;;  %1463 = vmatpush3.msra.mxu0 %v2260_v62  ;;  %v2332_v1 = vsub.f32 %v2175_v2, %v2207_v52  ;;  %v2941_v61 = vand.u32 4294901760, %v2295_v58  ;;  %v2340_v41 = vand.u32 4294901760, %v2312_v51  ;;  %v2354_v52 = vand.u32 4294901760, %v2323_v56 }
  0x6f   : > { %2938 = vst [vmem:[#allocation36_spill] sm:$0xff] %v2321_v26  ;;  %v481_v12 = vand.u32 4294901760, %v480_v28  ;;  %v599_v29 = vsub.f32 %v2282_v55, %v2939_v50  ;;  %1498 = vmatprep.subr.mxu1 %v593_v37  ;;  %1464 = vmatprep.subr.mxu0 %v2274_v19  ;;  %v2344_v50 = vsub.f32 %v2186_v13, %v2221_v21  ;;  %v2942_v37 = vand.u32 4294901760, %v2307_v60 }
  0x70   : > { %2940 = vst [vmem:[#allocation37_spill] sm:$0xff] %v2332_v1  ;;  %v487_v43 = vsub.f32 %v2295_v58, %v2941_v61  ;;  %1465 = vmatpush3.msra.mxu0 %v2285_v33  ;;  %v2943_v13 = vand.u32 4294901760, %v2318_v27  ;;  %v2364_v21 = vsub.f32 %v2209_v20, %v2240_v7  ;;  %v2945_v30 = vand.u32 4294901760, %v2332_v1 }
  0x71   : > { %1499 = vmatpush3.msra.mxu1 %v481_v12  ;;  %v600_v2 = vand.u32 4294901760, %v599_v29  ;;  %v606_v61 = vsub.f32 %v2307_v60, %v2942_v37  ;;  %1466 = vmatprep.subr.mxu0 %v2298_v46  ;;  %v223_v37 = vld [vmem:[%s2037_s11] sm:$0xff]  ;;  %v2372_v24 = vand.u32 4294901760, %v2346_v44  ;;  %v2946_v20 = vand.u32 4294901760, %v2344_v50 }
  0x72   : > { %v488_v32 = vand.u32 4294901760, %v487_v43  ;;  %v494_v12 = vsub.f32 %v2318_v27, %v2943_v13  ;;  %2944 = vst [vmem:[#allocation38_spill] sm:$0xff] %v2364_v21  ;;  %1467 = vmatpush3.msra.mxu0 %v2310_v14  ;;  %v613_v43 = vsub.f32 %v2332_v1, %v2945_v30  ;;  %v2376_v13 = vsub.f32 %v2232_v38, %v2260_v62 }
  0x73   : > { %1500 = vmatprep.subr.mxu1 %v600_v2  ;;  %v607_v28 = vand.u32 4294901760, %v606_v61  ;;  %1468 = vmatprep.subr.mxu0 %v2321_v26  ;;  %v501_v2 = vsub.f32 %v2344_v50, %v2946_v20  ;;  %v2863_v61 = vand.u32 4294901760, %v2364_v21  ;;  %v2383_v7 = vand.u32 4294901760, %v224_v36 }
  0x74   : > { %1501 = vmatpush3.msra.mxu1 %v488_v32  ;;  %v495_v29 = vand.u32 4294901760, %v494_v12  ;;  %v614_v30 = vand.u32 4294901760, %v613_v43  ;;  %1469 = vmatpush3.msra.mxu0 %v2340_v41  ;;  %v2864_v1 = vand.u32 4294901760, %v2376_v13  ;;  %v2389_v32 = vsub.f32 %v2242_v47, %v2274_v19 }
  0x75   : > { %2947 = vst [vmem:[#allocation39_spill] sm:$0xff] %v2383_v7  ;;  %1502 = vmatprep.subr.mxu1 %v607_v28  ;;  %v2391_v38 = vand.u32 4294901760, %v223_v37  ;;  %v502_v12 = vand.u32 4294901760, %v501_v2  ;;  %1470 = vmatprep.subr.mxu0 %v2354_v52  ;;  %v620_v20 = vsub.f32 %v2364_v21, %v2863_v61  ;;  %v2398_v28 = vsub.f32 %v224_v36, %v2383_v7 }
  0x76   : > { %1503 = vmatpush3.msra.mxu1 %v495_v29  ;;  %v2402_v43 = vsub.f32 %v2253_v49, %v2285_v33  ;;  %1471 = vmatpush3.msra.mxu0 %v2372_v24  ;;  %v508_v47 = vsub.f32 %v2376_v13, %v2864_v1  ;;  %v2414_v36 = vsub.f32 %v2266_v39, %v2298_v46 }
  0x77   : > { %2948 = vst [vmem:[#allocation40_spill] sm:$0xff] %v2391_v38  ;;  %1504 = vmatprep.subr.mxu1 %v614_v30  ;;  %v2410_v2 = vsub.f32 %v223_v37, %v2391_v38  ;;  %v621_v61 = vand.u32 4294901760, %v620_v20  ;;  %v2869_v49 = vand.u32 4294901760, %v2398_v28  ;;  %1528 = vmatprep.subr.mxu0 %v2063_v18  ;;  %v2421_v1 = vsub.f32 %v2276_v34, %v2310_v14 }
  0x78   : > { %1505 = vmatpush3.msra.mxu1 %v502_v12  ;;  %v2870_v30 = vand.u32 4294901760, %v2402_v43  ;;  %v509_v29 = vand.u32 4294901760, %v508_v47  ;;  %v2949_v37 = vand.u32 4294901760, %v2389_v32  ;;  %652 = vmatprep.mubr.f32.mxu1 %v2383_v7  ;;  %v2950_v7 = vand.u32 4294901760, %v2414_v36  ;;  %v226_v47 = vld [vmem:[%s2037_s11 + $0x18] sm:$0xff] }
  0x79   : > { %v2877_v39 = vand.u32 4294901760, %v2410_v2  ;;  %1506 = vmatprep.subr.mxu1 %v621_v61  ;;  %v369_v20 = vsub.f32 %v2398_v28, %v2869_v49 }
  0x7a   : > { %v627_v33 = vsub.f32 %v2389_v32, %v2949_v37  ;;  %v515_v34 = vsub.f32 %v2402_v43, %v2870_v30  ;;  %v2438_v37 = vsub.f32 %v2287_v53, %v2321_v26  ;;  %1507 = vmatpush3.msra.mxu1 %v509_v29  ;;  %v634_v49 = vsub.f32 %v2414_v36, %v2950_v7 }
  0x7b   : > { %v375_v61 = vsub.f32 %v2410_v2, %v2877_v39  ;;  %v2448_v30 = vsub.f32 %v2312_v51, %v2340_v41  ;;  %v370_v14 = vand.u32 4294901760, %v369_v20  ;;  %v2951_v53 = vand.u32 4294901760, %v2421_v1  ;;  %v225_v51 = vld [vmem:[%s2037_s11 + $0x10] sm:$0xff] }
  0x7c   : > { %v628_v12 = vand.u32 4294901760, %v627_v33  ;;  %v516_v46 = vand.u32 4294901760, %v515_v34  ;;  %v2882_v33 = vand.u32 4294901760, %v2438_v37  ;;  %v635_v39 = vand.u32 4294901760, %v634_v49 }
  0x7d   : > { %v522_v29 = vsub.f32 %v2421_v1, %v2951_v53  ;;  %v376_v26 = vand.u32 4294901760, %v375_v61  ;;  %v2879_v18 = vand.u32 4294901760, %v2448_v30  ;;  %v2458_v7 = vsub.f32 %v2323_v56, %v2354_v52  ;;  %371 = vmatprep.mubr.f32.mxu0 %v370_v14 }
  0x7e   : > { %1508 = vmatprep.subr.mxu1 %v628_v12  ;;  %v641_v34 = vsub.f32 %v2438_v37, %v2882_v33  ;;  %v2466_v12 = vsub.f32 %v2346_v44, %v2372_v24  ;;  %v2468_v49 = vand.u32 4294901760, %v226_v47  ;;  %v2476_v53 = vand.u32 4294901760, %v225_v51  ;;  %v228_v44 = vld [vmem:[%s2037_s11 + $0x28] sm:$0xff] }
  0x7f   : > { %1509 = vmatpush3.msra.mxu1 %v516_v46  ;;  %v523_v20 = vand.u32 4294901760, %v522_v29  ;;  %377 = vmatmul.mubr.f32.vlgmr.msra.gmra.mxu0 %v376_v26  ;;  %v529_v56 = vsub.f32 %v2448_v30, %v2879_v18  ;;  %v2880_v14 = vand.u32 4294901760, %v2458_v7  ;;  %v2492_v18 = vand.u32 4294901760, %v228_v44 }
  0x80   : > { %2952 = vst [vmem:[#allocation41_spill] sm:$0xff] %v2466_v12  ;;  %2953 = vst [vmem:[#allocation42_spill] sm:$0xff] %v2468_v49  ;;  %1510 = vmatprep.subr.mxu1 %v635_v39  ;;  %1529 = vmatpush3.msra.mxu0 %v2076_v23  ;;  %v642_v46 = vand.u32 4294901760, %v641_v34  ;;  %v2881_v61 = vand.u32 4294901760, %v2466_v12  ;;  %v227_v34 = vld [vmem:[%s2037_s11 + $0x20] sm:$0xff] }
  0x81   : > { %1511 = vmatpush3.msra.mxu1 %v523_v20  ;;  %2954 = vst [vmem:[#allocation43_spill] sm:$0xff] %v2476_v53  ;;  %1530 = vmatprep.subr.mxu0 %v2082_v25  ;;  %v530_v26 = vand.u32 4294901760, %v529_v56  ;;  %v648_v39 = vsub.f32 %v2458_v7, %v2880_v14  ;;  %v2488_v20 = vsub.f32 %v226_v47, %v2468_v49  ;;  %2955 = vst [vmem:[#allocation44_spill] sm:$0xff] %v2492_v18 }
  0x82   : > { %1531 = vmatpush3.msra.mxu0 %v2096_v31  ;;  %1512 = vmatprep.subr.mxu1 %v642_v46  ;;  %v536_v29 = vsub.f32 %v2466_v12, %v2881_v61  ;;  %v2496_v46 = vsub.f32 %v225_v51, %v2476_v53  ;;  %v2499_v61 = vand.u32 4294901760, %v227_v34 }
  0x83   : > { %1532 = vmatprep.subr.mxu0 %v2105_v35  ;;  %1513 = vmatpush3.msra.mxu1 %v530_v26  ;;  %v649_v56 = vand.u32 4294901760, %v648_v39  ;;  %v2885_v47 = vand.u32 4294901760, %v2488_v20  ;;  %v230_v26 = vld [vmem:[%s2037_s11 + $0x38] sm:$0xff]  ;;  %v2507_v39 = vsub.f32 %v228_v44, %v2492_v18 }
  0x84   : > { %1533 = vmatpush3.msra.mxu0 %v2118_v40  ;;  %v537_v14 = vand.u32 4294901760, %v536_v29  ;;  %2956 = vst [vmem:[#allocation45_spill] sm:$0xff] %v2499_v61  ;;  %v229_v29 = vld [vmem:[%s2037_s11 + $0x30] sm:$0xff] }
  0x85   : > { %1514 = vmatprep.subr.mxu1 %v649_v56  ;;  %1534 = vmatprep.subr.mxu0 %v2132_v45  ;;  %v2518_v56 = vand.u32 4294901760, %v230_v26  ;;  %v384_v44 = vsub.f32 %v2488_v20, %v2885_v47  ;;  %v2528_v51 = vand.u32 4294901760, %v229_v29 }
  0x86   : > { %1515 = vmatpush3.msra.mxu1 %v537_v14  ;;  %1535 = vmatpush3.msra.mxu0 %v2158_v59  ;;  %v2516_v14 = vsub.f32 %v227_v34, %v2499_v61  ;;  %v2957_v34 = vand.u32 4294901760, %v2496_v46 }
  0x87   : > { %654 = vmatmul.mubr.f32.vlgmr.msra.gmra.mxu1 %v2391_v38  ;;  %1536 = vmatprep.subr.mxu0 %v2170_v0  ;;  %v385_v33 = vand.u32 4294901760, %v384_v44 }
  0x88   : > { %1572 = vmatprep.subr.mxu1 %v2043_v3  ;;  %1537 = vmatpush3.msra.mxu0 %v2181_v8  ;;  %v390_v38 = vsub.f32 %v2496_v46, %v2957_v34  ;;  %v2893_v47 = vand.u32 4294901760, %v2516_v14  ;;  %v2958_v34 = vand.u32 4294901760, %v2507_v39 }
  0x89   : > { %1573 = vmatpush3.msra.mxu1 %v2045_v4  ;;  %1538 = vmatprep.subr.mxu0 %v2192_v42 }
  0x8a   : > { %1574 = vmatprep.subr.mxu1 %v2047_v5  ;;  %1539 = vmatpush3.msra.mxu0 %v2204_v48  ;;  %v405_v44 = vsub.f32 %v2516_v14, %v2893_v47 }
  0x8b   : > { %1575 = vmatpush3.msra.mxu1 %v2049_v9  ;;  %1540 = vmatprep.subr.mxu0 %v2218_v57  ;;  %v2539_v57 = vsub.f32 %v230_v26, %v2518_v56  ;;  %v391_v26 = vand.u32 4294901760, %v390_v38 }
  0x8c   : > { %1576 = vmatprep.subr.mxu1 %v2051_v10  ;;  %1541 = vmatpush3.msra.mxu0 %v2230_v6  ;;  %v406_v47 = vand.u32 4294901760, %v405_v44 }
  0x8d   : > { %1577 = vmatpush3.msra.mxu1 %v2053_v11  ;;  %1542 = vmatprep.subr.mxu0 %v2251_v54  ;;  %v399_v11 = vsub.f32 %v2507_v39, %v2958_v34  ;;  %v2549_v54 = vsub.f32 %v229_v29, %v2528_v51  ;;  %v2960_v29 = vld [vmem:[#allocation16_spill] sm:$0xff] }
  0x8e   : > { %1578 = vmatprep.subr.mxu1 %v2056_v15  ;;  %1543 = vmatpush3.msra.mxu0 %v2264_v63 }
  0x8f   : > { %1579 = vmatpush3.msra.mxu1 %v2058_v16  ;;  %1544 = vmatprep.subr.mxu0 %v2282_v55  ;;  %v2894_v55 = vand.u32 4294901760, %v2539_v57  ;;  %v2959_v16 = vld [vmem:[#allocation15_spill] sm:$0xff]  ;;  %v400_v34 = vand.u32 4294901760, %v399_v11  ;;  %v2896_v38 = vand.u32 4294901760, %v2549_v54 }
  0x90   : > { %1580 = vmatprep.subr.mxu1 %v2060_v17  ;;  %1545 = vmatpush3.msra.mxu0 %v2295_v58 }
  0x91   : > { %1581 = vmatpush3.msra.mxu1 %v2073_v22  ;;  %1546 = vmatprep.subr.mxu0 %v2307_v60  ;;  %v2961_v22 = vld [vmem:[#allocation37_spill] sm:$0xff]  ;;  %v420_v11 = vsub.f32 %v2549_v54, %v2896_v38  ;;  %v2968_v38 = vld [vmem:[#allocation23_spill] sm:$0xff] }
  0x92   : > { %1582 = vmatprep.subr.mxu1 %v2959_v16  ;;  %386 = vmatprep.mubr.f32.mxu0 %v385_v33  ;;  %v2962_v60 = vld [vmem:[#allocation17_spill] sm:$0xff]  ;;  %v414_v16 = vsub.f32 %v2539_v57, %v2894_v55  ;;  %v2963_v33 = vld [vmem:[#allocation18_spill] sm:$0xff] }
  0x93   : > { %1547 = vmatpush3.msra.mxu0 %v2318_v27  ;;  %1583 = vmatpush3.msra.mxu1 %v2960_v29  ;;  %v2964_v29 = vld [vmem:[#allocation19_spill] sm:$0xff]  ;;  %v2966_v55 = vld [vmem:[#allocation21_spill] sm:$0xff] }
  0x94   : > { %392 = vmatmul.mubr.f32.gmra.mxu0 %v391_v26  ;;  %1548 = vmatprep.subr.mxu0 %v2961_v22  ;;  %v2965_v26 = vld [vmem:[#allocation20_spill] sm:$0xff]  ;;  %v415_v44 = vand.u32 4294901760, %v414_v16  ;;  %v2970_v16 = vld [vmem:[#allocation25_spill] sm:$0xff] }
  0x95   : > { %1584 = vmatprep.subr.mxu1 %v2962_v60  ;;  %1549 = vmatpush3.msra.mxu0 %v2344_v50 }
  0x96   : > { %1585 = vmatpush3.msra.mxu1 %v2963_v33  ;;  %1550 = vmatprep.subr.mxu0 %v2364_v21  ;;  %v2967_v21 = vld [vmem:[#allocation22_spill] sm:$0xff] }
  0x97   : > { %1586 = vmatprep.subr.mxu1 %v2964_v29  ;;  %401 = vmatprep.mubr.f32.mxu0 %v400_v34  ;;  %v421_v34 = vand.u32 4294901760, %v420_v11  ;;  %v2972_v11 = vld [vmem:[#allocation28_spill] sm:$0xff] }
  0x98   : > { %1551 = vmatpush3.msra.mxu0 %v2376_v13  ;;  %1587 = vmatpush3.msra.mxu1 %v2965_v26 }
  0x99   : > { %407 = vmatmul.mubr.f32.gmra.mxu0 %v406_v47  ;;  %1552 = vmatprep.subr.mxu0 %v2389_v32  ;;  %v2969_v47 = vld [vmem:[#allocation24_spill] sm:$0xff] }
  0x9a   : > { %1588 = vmatprep.subr.mxu1 %v2966_v55  ;;  %1553 = vmatpush3.msra.mxu0 %v2402_v43 }
  0x9b   : > { %1589 = vmatpush3.msra.mxu1 %v2967_v21  ;;  %659 = vmatprep.mubr.f32.mxu1 %v2468_v49  ;;  %v2971_v49 = vld [vmem:[#allocation27_spill] sm:$0xff] }
  0x9c   : > { %1554 = vmatprep.subr.mxu0 %v2414_v36  ;;  %1590 = vmatprep.subr.mxu1 %v2968_v38 }
  0x9d   : > { %416 = vmatprep.mubr.f32.mxu0 %v415_v44  ;;  %661 = vmatmul.mubr.f32.gmra.mxu1 %v2476_v53  ;;  %v2973_v44 = vld [vmem:[#allocation13_spill] sm:$0xff]  ;;  %v2976_v53 = vand.u32 4294901760, %v2076_v23  ;;  %v2981_v23 = vld [vmem:[#allocation36_spill] sm:$0xff] }
  0x9e   : > { %1555 = vmatpush3.msra.mxu0 %v2421_v1  ;;  %1591 = vmatpush3.msra.mxu1 %v2969_v47 }
  0x9f   : > { %422 = vmatmul.mubr.f32.gmra.mxu0 %v421_v34  ;;  %1556 = vmatprep.subr.mxu0 %v2438_v37  ;;  %v2974_v34 = vand.u32 4294901760, %v2973_v44  ;;  %v2980_v44 = vand.u32 4294901760, %v2096_v31  ;;  %v2985_v31 = vand.u32 4294901760, %v2398_v28 }
  0xa0   : > { %1592 = vmatprep.subr.mxu1 %v2970_v16  ;;  %1557 = vmatpush3.msra.mxu0 %v2448_v30 }
  0xa1   : > { %1593 = vmatpush3.msra.mxu1 %v2971_v49  ;;  %666 = vmatprep.mubr.f32.mxu1 %v2492_v18  ;;  %v2975_v18 = vld [vmem:[#allocation32_spill] sm:$0xff] }
  0xa2   : > { %1558 = vmatprep.subr.mxu0 %v2458_v7  ;;  %1594 = vmatprep.subr.mxu1 %v2972_v11 }
  0xa3   : > { %668 = vmatmul.mubr.f32.gmra.mxu1 %v2499_v61  ;;  %1559 = vmatpush3.msra.mxu0 %v2466_v12  ;;  %v2977_v61 = vld [vmem:[#allocation33_spill] sm:$0xff]  ;;  %v2978_v12 = vand.u32 4294901760, %v2082_v25  ;;  %v2983_v25 = vand.u32 4294901760, %v2118_v40  ;;  %v2988_v40 = vand.u32 4294901760, %v2170_v0  ;;  %v2992_v0 = vand.u32 4294901760, %v2204_v48 }
  0xa4   : > { %810 = vmatprep.mubr.f32.mxu0 %v2398_v28  ;;  %1595 = vmatpush3.msra.mxu1 %v2260_v62  ;;  %v2990_v28 = vand.u32 4294901760, %v2192_v42  ;;  %v2997_v42 = vld [vmem:[#allocation11_spill] sm:$0xff] }
  0xa5   : > { %813 = vmatmul.mubr.f32.vlgmr.msra.gmra.mxu0 %v2410_v2  ;;  %1596 = vmatprep.subr.mxu1 %v2274_v19  ;;  %v2979_v19 = vld [vmem:[#allocation35_spill] sm:$0xff] }
  0xa6   : > { %1616 = vmatprep.subr.mxu0 %v2974_v34  ;;  %1597 = vmatpush3.msra.mxu1 %v2975_v18  ;;  %v2987_v34 = vand.u32 4294901760, %v2410_v2  ;;  %v2998_v2 = vld [vmem:[#allocation29_spill] sm:$0xff] }
  0xa7   : > { %1617 = vmatpush3.msra.mxu0 %v2976_v53  ;;  %673 = vmatprep.mubr.f32.mxu1 %v2518_v56  ;;  %v2982_v53 = vand.u32 4294901760, %v2105_v35  ;;  %v2986_v35 = vand.u32 4294901760, %v2158_v59  ;;  %v2991_v59 = vand.u32 4294901760, %v2488_v20  ;;  %v2999_v48 = vand.u32 4294901760, %v2998_v2 }
  0xa8   : > { %1598 = vmatprep.subr.mxu1 %v2977_v61  ;;  %1618 = vmatprep.subr.mxu0 %v2978_v12  ;;  %v2984_v12 = vand.u32 4294901760, %v2132_v45  ;;  %v2989_v45 = vand.u32 4294901760, %v2181_v8 }
  0xa9   : > { %675 = vmatmul.mubr.f32.gmra.mxu1 %v2528_v51  ;;  %819 = vmatprep.mubr.f32.mxu0 %v2488_v20  ;;  %v3001_v20 = vand.u32 4294901760, %v2264_v63  ;;  %v3010_v63 = vld [vmem:[#allocation15_spill] sm:$0xff] }
  0xaa   : > { %1599 = vmatpush3.msra.mxu1 %v2979_v19  ;;  %1619 = vmatpush3.msra.mxu0 %v2980_v44 }
  0xab   : > { %822 = vmatmul.mubr.f32.gmra.mxu0 %v2496_v46  ;;  %1600 = vmatprep.subr.mxu1 %v2981_v23 }
  0xac   : > { %1620 = vmatprep.subr.mxu0 %v2982_v53  ;;  %1601 = vmatpush3.msra.mxu1 %v2340_v41  ;;  %v3006_v53 = vand.u32 4294901760, %v2295_v58  ;;  %v3015_v58 = vand.u32 4294901760, %v2961_v22  ;;  %v3020_v22 = vand.u32 4294901760, %v2389_v32  ;;  %v3027_v32 = vld [vmem:[#allocation41_spill] sm:$0xff] }
  0xad   : > { %1621 = vmatpush3.msra.mxu0 %v2983_v25  ;;  %1602 = vmatprep.subr.mxu1 %v2354_v52 }
  0xae   : > { %1622 = vmatprep.subr.mxu0 %v2984_v12  ;;  %828 = vmatprep.mubr.f32.mxu0 %v2507_v39  ;;  %v3011_v12 = vand.u32 4294901760, %v2539_v57 }
  0xaf   : > { %1603 = vmatpush3.msra.mxu1 %v2372_v24  ;;  %944 = vmatprep.mubr.f32.mxu1 %v2985_v31  ;;  %v3013_v31 = vld [vmem:[#allocation16_spill] sm:$0xff] }
  0xb0   : > { %1623 = vmatpush3.msra.mxu0 %v2986_v35  ;;  %948 = vmatmul.mubr.f32.vlgmr.msra.gmra.mxu1 %v2987_v34  ;;  %v3016_v35 = vand.u32 4294901760, %v2344_v50  ;;  %v3023_v50 = vand.u32 4294901760, %v2421_v1  ;;  %v3028_v1 = vand.u32 4294901760, %v3027_v32 }
  0xb1   : > { %831 = vmatmul.mubr.f32.gmra.mxu0 %v2516_v14  ;;  %1624 = vmatprep.subr.mxu0 %v2988_v40 }
  0xb2   : > { %1660 = vmatprep.subr.mxu1 %v2043_v3  ;;  %1625 = vmatpush3.msra.mxu0 %v2989_v45  ;;  %v2993_v3 = vand.u32 4294901760, %v2496_v46  ;;  %v3002_v46 = vld [vmem:[#allocation12_spill] sm:$0xff] }
  0xb3   : > { %1661 = vmatpush3.msra.mxu1 %v2045_v4  ;;  %1626 = vmatprep.subr.mxu0 %v2990_v28  ;;  %v2994_v4 = vld [vmem:[#allocation26_spill] sm:$0xff] }
  0xb4   : > { %1662 = vmatprep.subr.mxu1 %v2047_v5  ;;  %837 = vmatprep.mubr.f32.mxu0 %v2539_v57  ;;  %v2995_v8 = vand.u32 4294901760, %v2994_v4  ;;  %v2996_v5 = vand.u32 4294901760, %v2230_v6  ;;  %v3004_v6 = vld [vmem:[#allocation31_spill] sm:$0xff]  ;;  %v3017_v57 = vld [vmem:[#allocation38_spill] sm:$0xff] }
  0xb5   : > { %955 = vmatprep.mubr.f32.mxu1 %v2991_v59  ;;  %1627 = vmatpush3.msra.mxu0 %v2992_v0  ;;  %v3005_v44 = vand.u32 4294901760, %v3004_v6  ;;  %v3018_v34 = vand.u32 4294901760, %v3017_v57 }
  0xb6   : > { %1663 = vmatpush3.msra.mxu1 %v2049_v9  ;;  %840 = vmatmul.mubr.f32.gmra.mxu0 %v2549_v54  ;;  %v3000_v9 = vand.u32 4294901760, %v2507_v39  ;;  %v3008_v39 = vld [vmem:[#allocation34_spill] sm:$0xff] }
  0xb7   : > { %959 = vmatmul.mubr.f32.gmra.mxu1 %v2993_v3  ;;  %1628 = vmatprep.subr.mxu0 %v2995_v8  ;;  %v3009_v25 = vand.u32 4294901760, %v3008_v39 }
  0xb8   : > { %1664 = vmatprep.subr.mxu1 %v2051_v10  ;;  %1629 = vmatpush3.msra.mxu0 %v2996_v5  ;;  %v3003_v10 = vand.u32 4294901760, %v2516_v14  ;;  %v3012_v14 = vand.u32 4294901760, %v2318_v27  ;;  %v3019_v27 = vand.u32 4294901760, %v2376_v13  ;;  %v3024_v13 = vand.u32 4294901760, %v2438_v37  ;;  %v3031_v37 = vld [vmem:[#allocation30_spill] sm:$0xff] }
  0xb9   : > { %1665 = vmatpush3.msra.mxu1 %v2997_v42  ;;  %1630 = vmatprep.subr.mxu0 %v2999_v48 }
  0xba   : > { %1666 = vmatprep.subr.mxu1 %v2056_v15  ;;  %966 = vmatprep.mubr.f32.mxu1 %v3000_v9  ;;  %v3007_v15 = vld [vmem:[#allocation14_spill] sm:$0xff] }
  0xbb   : > { %1631 = vmatpush3.msra.mxu0 %v3001_v20  ;;  %1667 = vmatpush3.msra.mxu1 %v3002_v46  ;;  %v1426_v20 = vld [vmem:[%s2815_s1] ss:$0 sm:$0xff] }
  0xbc   : > { %970 = vmatmul.mubr.f32.gmra.mxu1 %v3003_v10  ;;  %1632 = vmatprep.subr.mxu0 %v3005_v44 }
  0xbd   : > { %1668 = vmatprep.subr.mxu1 %v2060_v17  ;;  %1633 = vmatpush3.msra.mxu0 %v3006_v53  ;;  %v3014_v17 = vand.u32 4294901760, %v2549_v54  ;;  %v3022_v54 = vand.u32 4294901760, %v2414_v36  ;;  %v3030_v36 = vld [vmem:[#allocation40_spill] sm:$0xff] }
  0xbe   : > { %1669 = vmatpush3.msra.mxu1 %v3007_v15  ;;  %1634 = vmatprep.subr.mxu0 %v3009_v25 }
  0xbf   : > { %1670 = vmatprep.subr.mxu1 %v3010_v63  ;;  %977 = vmatprep.mubr.f32.mxu1 %v3011_v12 }
  0xc0   : > { %1635 = vmatpush3.msra.mxu0 %v3012_v14  ;;  %1671 = vmatpush3.msra.mxu1 %v3013_v31 }
  0xc1   : > { %981 = vmatmul.mubr.f32.gmra.mxu1 %v3014_v17  ;;  %1636 = vmatprep.subr.mxu0 %v3015_v58 }
  0xc2   : > { %1672 = vmatprep.subr.mxu1 %v2962_v60  ;;  %1637 = vmatpush3.msra.mxu0 %v3016_v35  ;;  %v3021_v60 = vand.u32 4294901760, %v2402_v43  ;;  %v3029_v43 = vld [vmem:[#allocation39_spill] sm:$0xff] }
  0xc3   : > { %1673 = vmatpush3.msra.mxu1 %v2963_v33  ;;  %1638 = vmatprep.subr.mxu0 %v3018_v34 }
  0xc4   : > { %1674 = vmatprep.subr.mxu1 %v2964_v29  ;;  %1639 = vmatpush3.msra.mxu0 %v3019_v27 }
  0xc5   : > { %1675 = vmatpush3.msra.mxu1 %v2965_v26  ;;  %1640 = vmatprep.subr.mxu0 %v3020_v22 }
  0xc6   : > { %1676 = vmatprep.subr.mxu1 %v2966_v55  ;;  %1641 = vmatpush3.msra.mxu0 %v3021_v60  ;;  %v3025_v55 = vand.u32 4294901760, %v2448_v30  ;;  %v3032_v30 = vld [vmem:[#allocation42_spill] sm:$0xff] }
  0xc7   : > { %1677 = vmatpush3.msra.mxu1 %v2967_v21  ;;  %1642 = vmatprep.subr.mxu0 %v3022_v54  ;;  %v3026_v21 = vand.u32 4294901760, %v2458_v7  ;;  %v3033_v7 = vld [vmem:[#allocation43_spill] sm:$0xff] }
  0xc8   : > { %1678 = vmatprep.subr.mxu1 %v2968_v38  ;;  %1643 = vmatpush3.msra.mxu0 %v3023_v50 }
  0xc9   : > { %1679 = vmatpush3.msra.mxu1 %v2969_v47  ;;  %1644 = vmatprep.subr.mxu0 %v3024_v13 }
  0xca   : > { %1680 = vmatprep.subr.mxu1 %v2970_v16  ;;  %1645 = vmatpush3.msra.mxu0 %v3025_v55 }
  0xcb   : > { %1681 = vmatpush3.msra.mxu1 %v2971_v49  ;;  %1646 = vmatprep.subr.mxu0 %v3026_v21 }
  0xcc   : > { %1682 = vmatprep.subr.mxu1 %v2972_v11  ;;  %1647 = vmatpush3.msra.mxu0 %v3028_v1 }
  0xcd   : > { %1147 = vmatprep.mubr.f32.mxu0 %v3029_v43  ;;  %1683 = vmatpush3.msra.mxu1 %v2260_v62  ;;  %v3034_v62 = vld [vmem:[#allocation44_spill] sm:$0xff] }
  0xce   : > { %1149 = vmatmul.mubr.f32.vlgmr.msra.gmra.mxu0 %v3030_v36  ;;  %1684 = vmatprep.subr.mxu1 %v3031_v37 }
  0xcf   : > { %1685 = vmatpush3.msra.mxu1 %v2975_v18  ;;  %1154 = vmatprep.mubr.f32.mxu0 %v3032_v30  ;;  %v3035_v18 = vld [vmem:[#allocation45_spill] sm:$0xff] }
  0xd0   : > { %1686 = vmatprep.subr.mxu1 %v2977_v61  ;;  %1272 = vmatprep.mubr.f32.mxu1 %v3029_v43 }
  0xd1   : > { %1687 = vmatpush3.msra.mxu1 %v2979_v19 }
  0xd2   : > { %1156 = vmatmul.mubr.f32.gmra.mxu0 %v3033_v7  ;;  %1688 = vmatprep.subr.mxu1 %v2981_v23 }
  0xd3   : > { %1689 = vmatpush3.msra.mxu1 %v2340_v41  ;;  %1161 = vmatprep.mubr.f32.mxu0 %v3034_v62 }
  0xd4   : > { %1690 = vmatprep.subr.mxu1 %v2354_v52 }
  0xd5   : > { %1691 = vmatpush3.msra.mxu1 %v2372_v24 }
  0xd6   : > { %1163 = vmatmul.mubr.f32.gmra.mxu0 %v3035_v18  ;;  %1274 = vmatmul.mubr.f32.vlgmr.msra.gmra.mxu1 %v3030_v36 }
  0xd7   : > { %1168 = vmatprep.mubr.f32.mxu0 %v2518_v56  ;;  %1279 = vmatprep.mubr.f32.mxu1 %v3032_v30 }
  0xda   : > { %1170 = vmatmul.mubr.f32.gmra.mxu0 %v2528_v51  ;;  %1281 = vmatmul.mubr.f32.gmra.mxu1 %v3033_v7 }
  0xdb   : > { %1286 = vmatprep.mubr.f32.mxu1 %v3034_v62 }
  0xde   : > { %1288 = vmatmul.mubr.f32.gmra.mxu1 %v3035_v18 }
  0xdf   : > { %1293 = vmatprep.mubr.f32.mxu1 %v2518_v56 }
  0xe2   : > { %1295 = vmatmul.mubr.f32.gmra.mxu1 %v2528_v51 }
 0x13f   : > { %v1472_v24 = vpop.f32.mrf.mxu0 }
 0x141   : > { %v1473_v41 = vpop.f32.mrf.mxu0 }
 0x142   : > { %v1474_v9 = vadd.f32 %v1473_v41, %v1472_v24 }
 0x144   : > { %v379_v44 = vadd.f32 %v1474_v9, %v1426_v20 }
 0x147   : > { %v1516_v19 = vpop.f32.mrf.mxu1 }
 0x149   : > { %v1517_v61 = vpop.f32.mrf.mxu1 }
 0x14a   : > { %v1518_v53 = vadd.f32 %v1517_v61, %v1516_v19 }
 0x14c   : > { %v656_v31 = vadd.f32 %v1518_v53, %v379_v44 }
 0x154   : > { %v1475_v52 = vpop.f32.mrf.mxu0 }
 0x156   : > { %v1476_v49 = vpop.f32.mrf.mxu0 }
 0x157   : > { %v1477_v15 = vadd.f32 %v1476_v49, %v1475_v52 }
 0x159   : > { %v1478_v29 = vpop.f32.mrf.mxu0  ;;  %v394_v17 = vadd.f32 %v1477_v15, %v1426_v20 }
 0x15b   : > { %v1479_v33 = vpop.f32.mrf.mxu0 }
 0x15c   : > { %v1480_v12 = vadd.f32 %v1479_v33, %v1478_v29 }
 0x15d   : > { %v1519_v38 = vpop.f32.mrf.mxu1 }
 0x15e   : > { %v409_v54 = vadd.f32 %v1480_v12, %v1426_v20 }
 0x15f   : > { %v1520_v26 = vpop.f32.mrf.mxu1  ;;  %v1481_v47 = vpop.f32.mrf.mxu0 }
 0x160   : > { %v1521_v58 = vadd.f32 %v1520_v26, %v1519_v38 }
 0x161   : > { %v1482_v11 = vpop.f32.mrf.mxu0 }
 0x162   : > { %v1483_v50 = vadd.f32 %v1482_v11, %v1481_v47  ;;  %v663_v32 = vadd.f32 %v1521_v58, %v394_v17 }
 0x163   : > { %v1522_v16 = vpop.f32.mrf.mxu1 }
 0x164   : > { %v424_v41 = vadd.f32 %v1483_v50, %v1426_v20 }
 0x165   : > { %v1523_v23 = vpop.f32.mrf.mxu1  ;;  %v1560_v40 = vpop.f32.mrf.mxu0 }
 0x166   : > { %v1524_v13 = vadd.f32 %v1523_v23, %v1522_v16 }
 0x167   : > { %v1561_v28 = vpop.f32.mrf.mxu0 }
 0x168   : > { %v1562_v63 = vadd.f32 %v1561_v28, %v1560_v40  ;;  %v670_v52 = vadd.f32 %v1524_v13, %v409_v54 }
 0x169   : > { %v1525_v45 = vpop.f32.mrf.mxu1 }
 0x16a   : > { %v815_v27 = vadd.f32 %v1562_v63, %v656_v31 }
 0x16b   : > { %v1526_v56 = vpop.f32.mrf.mxu1  ;;  %v1563_v59 = vpop.f32.mrf.mxu0 }
 0x16c   : > { %v1527_v61 = vadd.f32 %v1526_v56, %v1525_v45 }
 0x16d   : > { %v1564_v0 = vpop.f32.mrf.mxu0 }
 0x16e   : > { %v1565_v22 = vadd.f32 %v1564_v0, %v1563_v59 }
 0x170   : > { %v1604_v51 = vpop.f32.mrf.mxu1  ;;  %v824_v7 = vadd.f32 %v1565_v22, %v663_v32 }
 0x171   : > { %v1566_v4 = vpop.f32.mrf.mxu0 }
 0x172   : > { %v1605_v3 = vpop.f32.mrf.mxu1 }
 0x173   : > { %v1567_v5 = vpop.f32.mrf.mxu0  ;;  %v1606_v35 = vadd.f32 %v1605_v3, %v1604_v51  ;;  %v677_v51 = vadd.f32 %v1527_v61, %v424_v41 }
 0x174   : > { %v1568_v36 = vadd.f32 %v1567_v5, %v1566_v4 }
 0x175   : > { %v950_v1 = vadd.f32 %v1606_v35, %v815_v27 }
 0x176   : > { %v1569_v2 = vpop.f32.mrf.mxu0  ;;  %v833_v26 = vadd.f32 %v1568_v36, %v670_v52 }
 0x177   : > { %v1607_v8 = vpop.f32.mrf.mxu1 }
 0x178   : > { %v1570_v46 = vpop.f32.mrf.mxu0 }
 0x179   : > { %v1608_v42 = vpop.f32.mrf.mxu1  ;;  %v1571_v16 = vadd.f32 %v1570_v46, %v1569_v2 }
 0x17a   : > { %v1609_v43 = vadd.f32 %v1608_v42, %v1607_v8 }
 0x17b   : > { %v842_v4 = vadd.f32 %v1571_v16, %v677_v51 }
 0x17c   : > { %v1610_v48 = vpop.f32.mrf.mxu1  ;;  %v961_v29 = vadd.f32 %v1609_v43, %v824_v7 }
 0x17e   : > { %v1611_v10 = vpop.f32.mrf.mxu1 }
 0x17f   : > { %v1612_v38 = vadd.f32 %v1611_v10, %v1610_v48 }
 0x181   : > { %v1613_v39 = vpop.f32.mrf.mxu1  ;;  %v972_v0 = vadd.f32 %v1612_v38, %v833_v26 }
 0x183   : > { %v1614_v57 = vpop.f32.mrf.mxu1 }
 0x184   : > { %v1615_v45 = vadd.f32 %v1614_v57, %v1613_v39 }
 0x186   : > { %v983_v48 = vadd.f32 %v1615_v45, %v842_v4 }
 0x18e   : > { %v1648_v6 = vpop.f32.mrf.mxu0 }
 0x190   : > { %v1649_v25 = vpop.f32.mrf.mxu0 }
 0x191   : > { %v1650_v60 = vadd.f32 %v1649_v25, %v1648_v6 }
 0x192   : > { %v1651_v14 = vpop.f32.mrf.mxu0 }
 0x193   : > { %v1151_v62 = vadd.f32 %v1650_v60, %v950_v1 }
 0x194   : > { %v1652_v34 = vpop.f32.mrf.mxu0 }
 0x195   : > { %v1653_v18 = vadd.f32 %v1652_v34, %v1651_v14 }
 0x196   : > { %v1654_v55 = vpop.f32.mrf.mxu0  ;;  %v1692_v21 = vpop.f32.mrf.mxu1 }
 0x197   : > { %v1158_v11 = vadd.f32 %v1653_v18, %v961_v29 }
 0x198   : > { %v1655_v37 = vpop.f32.mrf.mxu0  ;;  %v1693_v30 = vpop.f32.mrf.mxu1 }
 0x199   : > { %v1694_v24 = vadd.f32 %v1693_v30, %v1692_v21  ;;  %v1656_v23 = vadd.f32 %v1655_v37, %v1654_v55 }
 0x19a   : > { %v1657_v19 = vpop.f32.mrf.mxu0  ;;  %v1695_v49 = vpop.f32.mrf.mxu1 }
 0x19b   : > { %v1276_v33 = vadd.f32 %v1694_v24, %v1151_v62  ;;  %v1165_v8 = vadd.f32 %v1656_v23, %v972_v0 }
 0x19c   : > { %v1696_v47 = vpop.f32.mrf.mxu1  ;;  %v1658_v28 = vpop.f32.mrf.mxu0 }
 0x19d   : > { %1300 = vst [vmem:[%s2747_s29] sm:$0xff] %v1276_v33  ;;  %v1697_v40 = vadd.f32 %v1696_v47, %v1695_v49  ;;  %v1659_v5 = vadd.f32 %v1658_v28, %v1657_v19 }
 0x19e   : > { %v1698_v59 = vpop.f32.mrf.mxu1 }
 0x19f   : > { %v1283_v56 = vadd.f32 %v1697_v40, %v1158_v11  ;;  %v1172_v46 = vadd.f32 %v1659_v5, %v983_v48 }
 0x1a0   : > { %v1699_v3 = vpop.f32.mrf.mxu1 }
 0x1a1   : > { %1301 = vst [vmem:[%s2747_s29 + $0x8] sm:$0xff] %v1283_v56  ;;  %v1700_v42 = vadd.f32 %v1699_v3, %v1698_v59 }
 0x1a2   : > { %v1701_v2 = vpop.f32.mrf.mxu1 }
 0x1a3   : > { %v1290_v9 = vadd.f32 %v1700_v42, %v1165_v8 }
 0x1a4   : > { %v1702_v20 = vpop.f32.mrf.mxu1 }
 0x1a5   : > { %1302 = vst [vmem:[%s2747_s29 + $0x10] sm:$0xff] %v1290_v9  ;;  %v1703_v10 = vadd.f32 %v1702_v20, %v1701_v2  ;;  %1311 = sbr.rel (!%p3036_p4) target bundleno = 453 (0x1c5), region = 44 }
 0x1a7   : > { %v1297_v6 = vadd.f32 %v1703_v10, %v1172_v46 }
 0x1a9   : > { %1303 = vst [vmem:[%s2747_s29 + $0x18] sm:$0xff] %v1297_v6 }
 0x1aa   : > { %s3045_s8 = smov (!%p1314_p13, %s1313_s8), 4 }
 0x1ab   : > { %s2757_s9 = sshll.u32 %s3045_s8, 7 }
 0x1ac   : > { %s1318_s10 = ssub.s32 512, %s2757_s9 }
 0x1ad   : > { %1319 = vsyncadd %s1305_s30, %s1318_s10  ;;  %p1430_p1 = scmp.ne.s32.totalorder %s2757_s9, 0  ;;  %s1439_s24 = sshll.u32 %s1932_s16, 9 }
 0x1ae   : > { %s2767_s22 = scalar_lea.hbm %s2817_s3, %s1439_s24  ;;  %s1324_s27 = sshll.u32 %s2747_s29, 4  ;;  %s2770_s27 = int_to_ptr.vmem [resolvable:$true] %s1324_s27 }
 0x1af   : > { %s1812_s28 = scalar_lea.vmem %s2770_s27, %s2757_s9  ;;  %s1888_s5 = smov [#allocation7]  }
 0x1b0   : > { %p1813_p0 = scmp.ne.s32.totalorder %s2770_s27, %s1812_s28  ;;  %s1816_s6 = sshll.u32 %s1888_s5, 4  ;;  %s1817_s6 = int_to_ptr.vmem [resolvable:$false] %s1816_s6 }
 0x1b1   : > { %s1818_s16 = scalar_lea.vmem %s1817_s6, 1024  ;;  %p1819_p8 = scmp.lt.s32.totalorder %s2770_s27, %s1817_s6 }
 0x1b2   : > { %p1814_p7 = pnand %p1813_p0, %p1430_p1  ;;  %p1820_p9 = scmp.lt.s32.totalorder %s1818_s16, %s1812_s28 }
 0x1b4   : > { %p1815_p3 = pneg %p1814_p7  ;;  %p1821_p10 = por %p1820_p9, %p1819_p8 }
 0x1b6   : > { %p1822_p6 = pnand %p1821_p10, %p1815_p3 }
 0x1b8   : > { %1825 = shalt.err (!%p1822_p6)
}
 0x1b9   : > { %s1826_s11 = scalar_lea.hbm %s2767_s22, %s2757_s9  ;;  %s1830_s19 = scalar_lea.hbm %s2817_s3, 1280 }
 0x1ba   : > { %p1827_p11 = scmp.ne.s32.totalorder %s2767_s22, %s1826_s11  ;;  %p1831_p5 = scmp.lt.s32.totalorder %s2767_s22, %s2817_s3 }
 0x1bb   : > { %p1832_p4 = scmp.lt.s32.totalorder %s1830_s19, %s1826_s11 }
 0x1bc   : > { %p1828_p12 = pnand %p1827_p11, %p1430_p1 }
 0x1bd   : > { %p1833_p13 = por %p1832_p4, %p1831_p5 }
 0x1be   : > { %p1829_p2 = pneg %p1828_p12 }
 0x1c0   : > { %p1834_p0 = pnand %p1833_p13, %p1829_p2 }
 0x1c2   : > { %1837 = shalt.err (!%p1834_p0)
}
 0x1c3   : > { %s1889_s8 = smov 128   ;;  %s1890_s10 = smov 8  }
 0x1c4   : > { %1330 = dma.vmem_to_hbm [thread:$0]  (%p1430_p1), %s2770_s27, %s2757_s9, %s2767_s22, %s1305_s30, %s1889_s8, %s1889_s8, %s1890_s10  }
 0x1c5 PF: > { %p1720_p7 = scmp.ge.s32.totalorder %s1880_s15, 2  ;;  %s1339_s24 = sand.u32 1, %s1868_s12  }
 0x1c6   : > { %p3037_p3 = scmp.ne.s32.totalorder %s2910_s25, 0  ;;  %s1340_s17 = scalar_lea.sflag [#allocation4], %s1339_s24 }
 0x1c8   : > { %p1715_p8 = pnand %p1720_p7, %p3037_p3 }
 0x1ca   : > { %p1716_p9 = pneg %p1715_p8 }
 0x1cc   : > { %1863 = dma.done.wait (%p1716_p9), %s1340_s17, 512  }
 0x1cd   : > { %1865 = vsyncadd (%p1716_p9), %s1340_s17, 4294966784  ;;  %p17_p10 = scmp.ge.s32.totalorder %s1936_s18, 5   ;;  %s3038_s12 = smov %s1872_s13 }
 0x1ce   : > { %s3039_s13 = smov %s1876_s14  ;;  %s3040_s14 = smov %s1948_s21 }
 0x1cf   : > { %s3041_s15 = smov %s1936_s18  ;;  %19 = sbr.rel (!%p17_p10) target bundleno = 6 (0x6), region = 82 }
 0x1d4   :  { %1345 = vsyncpa [#allocation3], 1 }
 0x1d5   :  { %1347 = vsyncpa [#allocation3 + $0x1], 1 }
 0x1d6   :  { %1348 = vsyncpa [#allocation6], 1 }
 0x1d7   :  { %1350 = vsyncpa [#allocation6 + $0x1], 1 }
 0x1d8   :  { %1351 = vsyncpa [#allocation4], 1 }
 0x1d9   :  { %1353 = vsyncpa [#allocation4 + $0x1], 1 }

</bundles_post_ra>
